<compile_context>
chip_gen: v6e
topology: v6e:2x2x1
jax: 0.10.0
libtpu: 0.0.40
codegen_flags: <defaults>
</compile_context>

<pallas_src>
import functools

import numpy as np
import jax
import jax.numpy as jnp
from jax import lax
from jax.experimental import pallas as pl
from jax.experimental.pallas import tpu as pltpu


def mann_seq_kernel(x_ref, state0_ref, M0_ref, Wc_ref, bc_ref, Wl_ref, bl_ref,
                    states_ref, M_out_ref, state_vmem,
                    *, lstm_size, memory_size, memory_dim, nb_reads, gamma):
    L = lstm_size
    N = memory_size
    md = memory_dim
    nr = nb_reads
    eps = 1e-8
    t = pl.program_id(0)

    # ---- one-time init of the VMEM-resident recurrent state (t == 0) -------
    @pl.when(t == 0)
    def _():
        state_vmem[...] = state0_ref[...]
        M_out_ref[...] = M0_ref[...]

    # packed state layout along lanes: [h(L) | c(L) | r(nr*md) | wu(N) | wr(nr*N)]
    packed = state_vmem[...]                           # (B, 2L+nr*md+N+nr*N)
    o_r = 2 * L
    o_wu = 2 * L + nr * md
    o_wr = o_wu + N
    h_prev = packed[:, 0:L]
    c_prev = packed[:, L:2 * L]
    r_prev = packed[:, o_r:o_r + nr * md]
    wu_prev = packed[:, o_wu:o_wu + N]
    wr_prev = packed[:, o_wr:o_wr + nr * N]
    M_prev = M_out_ref[...]                            # (B, N, md) resident
    B = h_prev.shape[0]

    # ---- LSTMCell controller: single fused matmul over [x, r_prev, h_prev] --
    x_t = x_ref[0]                                     # (B, input_dim)
    ctrl = jnp.concatenate([x_t, r_prev, h_prev], axis=-1)
    gates = (jnp.dot(ctrl, Wc_ref[...], preferred_element_type=jnp.float32)
             + bc_ref[...])                            # (B, 4L), torch order i,f,g,o
    i_g = jax.nn.sigmoid(gates[:, 0:L])
    f_g = jax.nn.sigmoid(gates[:, L:2 * L])
    g_g = jnp.tanh(gates[:, 2 * L:3 * L])
    o_g = jax.nn.sigmoid(gates[:, 3 * L:4 * L])
    c_t = f_g * c_prev + i_g * g_g
    h_t = o_g * jnp.tanh(c_t)

    # ---- parameter head ------------------------------------------------------
    par = (jnp.dot(h_t, Wl_ref[...], preferred_element_type=jnp.float32)
           + bl_ref[...])                              # (B, 2*nr*md + nr)
    k_all = jnp.tanh(par[:, 0:nr * md]).reshape(B, nr, md)
    a_all = jnp.tanh(par[:, nr * md:2 * nr * md]).reshape(B, nr, md)
    alpha = jax.nn.sigmoid(par[:, 2 * nr * md:2 * nr * md + nr])      # (B, nr)

    # ---- least_used(wu_prev): descending rank, stable index tie-break -------
    wu_i = wu_prev[:, :, None]                         # (B, N, 1)
    wu_j = wu_prev[:, None, :]                         # (B, 1, N)
    ii = lax.broadcasted_iota(jnp.int32, (1, N, N), 1)
    jj = lax.broadcasted_iota(jnp.int32, (1, N, N), 2)
    before = jnp.logical_or(wu_j > wu_i,
                            jnp.logical_and(wu_j == wu_i, jj < ii))
    rank = jnp.sum(before.astype(jnp.float32), axis=2)                # (B, N)
    wlu_prev = (rank >= float(N - nr)).astype(jnp.float32)            # nr least-used slots
    lu_onehot = (rank == float(N - 1)).astype(jnp.float32)            # single least-used slot
    # TODO(synk): O(N^2) ranking is fine for small memory_size; replace with a
    # threshold against the nr-th smallest usage if N is scaled up.

    # ---- read addressing: batched cosine similarity + softmax over N --------
    inner = jnp.einsum('brd,bnd->brn', k_all, M_prev,
                       preferred_element_type=jnp.float32)            # (B, nr, N)
    k_sq = jnp.sum(k_all * k_all, axis=2)                             # (B, nr)
    M_sq = jnp.sum(M_prev * M_prev, axis=2)                           # (B, N)
    norm_prod = jnp.sqrt(k_sq[:, :, None] * M_sq[:, None, :])         # == |k|*|M|
    K = inner * pl.reciprocal(norm_prod + eps, approx=True)
    K = K - jnp.max(K, axis=-1, keepdims=True)
    expK = jnp.exp(K)
    wr_t = expK * pl.reciprocal(jnp.sum(expK, axis=-1, keepdims=True),
                                approx=True)                          # (B, nr, N)

    # ---- write addressing (all heads at once) --------------------------------
    wr_prev3 = wr_prev.reshape(B, nr, N)
    ww_t = (alpha[:, :, None] * wr_prev3
            + (1.0 - alpha[:, :, None]) * wlu_prev[:, None, :])       # (B, nr, N)

    wu_t = gamma * wu_prev + jnp.sum(wr_t, axis=1) + jnp.sum(ww_t, axis=1)

    # ---- memory update: erase single least-used row, add outer products ------
    M_t = M_prev * (1.0 - lu_onehot)[:, :, None]                      # (B, N, md)
    M_t = M_t + jnp.einsum('bnr,brd->bnd', jnp.swapaxes(ww_t, 1, 2), a_all,
                           preferred_element_type=jnp.float32)

    # ---- reads from the UPDATED memory ----------------------------------------
    r_t = jnp.einsum('brn,bnd->brd', wr_t, M_t,
                     preferred_element_type=jnp.float32)              # (B, nr, md)
    r_flat = r_t.reshape(B, nr * md)
    wr_flat = wr_t.reshape(B, nr * N)

    new_packed = jnp.concatenate([h_t, c_t, r_flat, wu_t, wr_flat], axis=-1)
    state_vmem[...] = new_packed          # carry to next grid step (VMEM scratch)
    states_ref[0] = new_packed            # lane-dense per-step output slab
    M_out_ref[...] = M_t                  # memory stays resident; 1 HBM DMA at end
    # TODO(synk): torch's `self.step += 1` is host-side bookkeeping, not modeled.


def mann_cell_sequence(params, x_seq, init_state, *, lstm_size, memory_size,
                       memory_dim, nb_reads, gamma=0.95):
    """Run T MANNCell steps in one fused pallas_call. x_seq: (T, B, input_dim)."""
    T, B, input_dim = x_seq.shape
    L, N, md, nr = lstm_size, memory_size, memory_dim, nb_reads
    d_state = 2 * L + nr * md + N + nr * N

    h0, c0 = init_state['controller_state']
    state0 = jnp.concatenate([h0, c0, init_state['read_vector'],
                              init_state['wu'], init_state['wr']], axis=-1)

    # Fuse the two LSTM weight matrices / biases once on the host.
    W_cat = jnp.concatenate([params['W_ih'], params['W_hh']], axis=0)   # (cin+L, 4L)
    b_cat = params['b_ih'] + params['b_hh']                             # (1, 4L)
    cin_h = W_cat.shape[0]
    p_dim = params['W_lin'].shape[1]

    kernel = functools.partial(
        mann_seq_kernel, lstm_size=L, memory_size=N, memory_dim=md,
        nb_reads=nr, gamma=gamma)

    grid_spec = pltpu.PrefetchScalarGridSpec(
        num_scalar_prefetch=0,
        grid=(T,),
        in_specs=[
            pl.BlockSpec((1, B, input_dim), lambda t: (t, 0, 0)),   # x_t streamed
            pl.BlockSpec((B, d_state), lambda t: (0, 0)),           # init state (1 DMA)
            pl.BlockSpec((B, N, md), lambda t: (0, 0, 0)),          # init memory (1 DMA)
            pl.BlockSpec((cin_h, 4 * L), lambda t: (0, 0)),         # W_cat resident
            pl.BlockSpec((1, 4 * L), lambda t: (0, 0)),             # b_cat resident
            pl.BlockSpec((L, p_dim), lambda t: (0, 0)),             # W_lin resident
            pl.BlockSpec((1, p_dim), lambda t: (0, 0)),             # b_lin resident
        ],
        out_specs=(
            pl.BlockSpec((1, B, d_state), lambda t: (t, 0, 0)),     # per-step state slab
            pl.BlockSpec((B, N, md), lambda t: (0, 0, 0)),          # final memory (revisited)
        ),
        scratch_shapes=[pltpu.VMEM((B, d_state), jnp.float32)],     # carried state
    )

    states_seq, M_final = pl.pallas_call(
        kernel,
        grid_spec=grid_spec,
        out_shape=(jax.ShapeDtypeStruct((T, B, d_state), jnp.float32),
                   jax.ShapeDtypeStruct((B, N, md), jnp.float32)),
        compiler_params=pltpu.CompilerParams(
            dimension_semantics=("arbitrary",)),                    # state recurrence
    )(x_seq, state0, init_state['M'], W_cat, b_cat,
      params['W_lin'], params['b_lin'])

    # Unpack the lane-dense slab in the wrapper (free XLA slices).
    h_seq = states_seq[:, :, 0:L]
    c_seq = states_seq[:, :, L:2 * L]
    r_seq = states_seq[:, :, 2 * L:2 * L + nr * md]
    wu_seq = states_seq[:, :, 2 * L + nr * md:2 * L + nr * md + N]
    wr_seq = states_seq[:, :, 2 * L + nr * md + N:]

    outputs = jnp.concatenate([h_seq, r_seq], axis=-1)              # (T, B, L + nr*md)
    final_state = {'M': M_final,
                   'read_vector': r_seq[-1],
                   'controller_state': (h_seq[-1], c_seq[-1]),
                   'wu': wu_seq[-1],
                   'wr': wr_seq[-1]}
    return outputs, final_state


def mann_cell_forward(params, x, prev_state, *, lstm_size, memory_size,
                      memory_dim, nb_reads, gamma=0.95):
    """Single step — mirrors torch MANNCell.forward (T == 1)."""
    outputs, state = mann_cell_sequence(
        params, x[None], prev_state,
        lstm_size=lstm_size, memory_size=memory_size,
        memory_dim=memory_dim, nb_reads=nb_reads, gamma=gamma)
    return outputs[0], state


# ----------------------------- pure-JAX reference -----------------------------
def mann_cell_step_ref(params, x, state, *, lstm_size, memory_size,
                       memory_dim, nb_reads, gamma=0.95):
    L, N, md, nr = lstm_size, memory_size, memory_dim, nb_reads
    eps = 1e-8
    M_prev = state['M']
    r_prev = state['read_vector']
    h_prev, c_prev = state['controller_state']
    wu_prev = state['wu']
    wr_prev = state['wr']
    B = x.shape[0]

    ctrl = jnp.concatenate([x, r_prev], axis=-1)
    gates = (ctrl @ params['W_ih'] + params['b_ih']
             + h_prev @ params['W_hh'] + params['b_hh'])
    i_g = jax.nn.sigmoid(gates[:, 0:L])
    f_g = jax.nn.sigmoid(gates[:, L:2 * L])
    g_g = jnp.tanh(gates[:, 2 * L:3 * L])
    o_g = jax.nn.sigmoid(gates[:, 3 * L:4 * L])
    c_t = f_g * c_prev + i_g * g_g
    h_t = o_g * jnp.tanh(c_t)

    par = h_t @ params['W_lin'] + params['b_lin']
    k = jnp.tanh(par[:, 0:nr * md]).reshape(B, nr, md)
    a = jnp.tanh(par[:, nr * md:2 * nr * md]).reshape(B, nr, md)
    alpha = jax.nn.sigmoid(par[:, -nr:])

    order = jnp.argsort(-wu_prev, axis=-1)                 # descending, stable
    wlu = jnp.sum(jax.nn.one_hot(order[:, -nr:], N), axis=1)
    lu_onehot = jax.nn.one_hot(order[:, -1], N)

    inner = jnp.einsum('brd,bnd->brn', k, M_prev)
    k_norm = jnp.sqrt(jnp.sum(k * k, axis=2, keepdims=True))
    M_norm = jnp.sqrt(jnp.sum(M_prev * M_prev, axis=2))[:, None, :]
    K = inner / (k_norm * M_norm + eps)
    wr_t = jax.nn.softmax(K, axis=-1)

    ww_t = (alpha[:, :, None] * wr_prev.reshape(B, nr, N)
            + (1.0 - alpha[:, :, None]) * wlu[:, None, :])
    wu_t = gamma * wu_prev + jnp.sum(wr_t, axis=1) + jnp.sum(ww_t, axis=1)
    M_t = M_prev * (1.0 - lu_onehot)[:, :, None]
    M_t = M_t + jnp.einsum('brn,brd->bnd', ww_t, a)
    r_t = jnp.einsum('brn,bnd->brd', wr_t, M_t).reshape(B, nr * md)

    out = jnp.concatenate([h_t, r_t], axis=-1)
    new_state = {'M': M_t, 'read_vector': r_t, 'controller_state': (h_t, c_t),
                 'wu': wu_t, 'wr': wr_t.reshape(B, nr * N)}
    return out, new_state


if __name__ == "__main__":
    batch = 2
    lstm_size = 32
    memory_size = 16
    memory_dim = 8
    nb_reads = 2
    input_dim = 16
    gamma = 0.95
    T = 8

    controller_input = input_dim + nb_reads * memory_dim            # 32
    param_dim = (memory_dim * 2 + 1) * nb_reads                     # 34

    key = jax.random.PRNGKey(0)
    ks = jax.random.split(key, 16)
    scale = 0.1

    params = {
        # weights stored pre-transposed: (in_features, out_features)
        'W_ih': scale * jax.random.normal(ks[0], (controller_input, 4 * lstm_size), jnp.float32),
        'b_ih': scale * jax.random.normal(ks[1], (1, 4 * lstm_size), jnp.float32),
        'W_hh': scale * jax.random.normal(ks[2], (lstm_size, 4 * lstm_size), jnp.float32),
        'b_hh': scale * jax.random.normal(ks[3], (1, 4 * lstm_size), jnp.float32),
        'W_lin': scale * jax.random.normal(ks[4], (lstm_size, param_dim), jnp.float32),
        'b_lin': scale * jax.random.normal(ks[5], (1, param_dim), jnp.float32),
    }

    x_seq = jax.random.normal(ks[6], (T, batch, input_dim), jnp.float32)

    prev_state = {
        'M': jax.random.normal(ks[7], (batch, memory_size, memory_dim), jnp.float32),
        'read_vector': jax.random.normal(ks[8], (batch, nb_reads * memory_dim), jnp.float32),
        'controller_state': (
            jax.random.normal(ks[9], (batch, lstm_size), jnp.float32),
            jax.random.normal(ks[10], (batch, lstm_size), jnp.float32),
        ),
        # distinct usage values so the least-used ranking is unambiguous
        'wu': jax.random.uniform(ks[11], (batch, memory_size), jnp.float32),
        'wr': jax.nn.softmax(
            jax.random.normal(ks[12], (batch, nb_reads * memory_size), jnp.float32),
            axis=-1),
    }

    cfg = dict(lstm_size=lstm_size, memory_size=memory_size,
               memory_dim=memory_dim, nb_reads=nb_reads, gamma=gamma)

    # fused T-step kernel
    outputs, state = mann_cell_sequence(params, x_seq, prev_state, **cfg)
    jax.block_until_ready((outputs, state))

    # single-step API (mirrors the torch module forward)
    step_out, step_state = mann_cell_forward(params, x_seq[0], prev_state, **cfg)
    jax.block_until_ready((step_out, step_state))

    # pure-JAX reference over the same T steps
    ref_state = prev_state
    ref_outs = []
    for t in range(T):
        o, ref_state = mann_cell_step_ref(params, x_seq[t], ref_state, **cfg)
        ref_outs.append(o)
    ref_outs = jnp.stack(ref_outs)

    # tolerance accounts for approx-EUP reciprocals inside the kernel
    np.testing.assert_allclose(np.asarray(outputs), np.asarray(ref_outs),
                               rtol=5e-2, atol=5e-2)
    np.testing.assert_allclose(np.asarray(state['M']), np.asarray(ref_state['M']),
                               rtol=5e-2, atol=5e-2)
    np.testing.assert_allclose(np.asarray(state['wu']), np.asarray(ref_state['wu']),
                               rtol=5e-2, atol=5e-2)
    np.testing.assert_allclose(np.asarray(state['wr']), np.asarray(ref_state['wr']),
                               rtol=5e-2, atol=5e-2)
    np.testing.assert_allclose(np.asarray(step_out), np.asarray(ref_outs[0]),
                               rtol=5e-2, atol=5e-2)

    assert outputs.shape == (T, batch, lstm_size + nb_reads * memory_dim)
    assert step_out.shape == (batch, lstm_size + nb_reads * memory_dim)
    assert state['M'].shape == (batch, memory_size, memory_dim)
    assert state['wu'].shape == (batch, memory_size)
    assert state['wr'].shape == (batch, nb_reads * memory_size)
    assert bool(jnp.all(jnp.isfinite(outputs)))

    print("KERNEL_OK")
</pallas_src>

<mosaic_0001>
module attributes {stable_mosaic.version = 11 : i64} {
  func.func @mann_seq_kernel(%arg0: i32, %arg1: memref<1x2x16xf32, #tpu.memory_space<vmem>>, %arg2: memref<2x128xf32, #tpu.memory_space<vmem>>, %arg3: memref<2x16x8xf32, #tpu.memory_space<vmem>>, %arg4: memref<64x128xf32, #tpu.memory_space<vmem>>, %arg5: memref<1x128xf32, #tpu.memory_space<vmem>>, %arg6: memref<32x34xf32, #tpu.memory_space<vmem>>, %arg7: memref<1x34xf32, #tpu.memory_space<vmem>>, %arg8: memref<1x2x128xf32, #tpu.memory_space<vmem>>, %arg9: memref<2x16x8xf32, #tpu.memory_space<vmem>>, %arg10: memref<2x128xf32, #tpu.memory_space<vmem>>) attributes {dimension_semantics = [#tpu.dimension_semantics<arbitrary>], iteration_bounds = array<i64: 8>, scalar_prefetch = 0 : i64, scratch_operands = 1 : i64, tpu.core_type = #tpu.core_type<tc>, window_params = [{transform_indices = @transform_0, window_bounds = array<i64: 1, 2, 16>}, {pipeline_mode = #tpu.pipeline_mode<synchronous>, transform_indices = @transform_1, window_bounds = array<i64: 2, 128>}, {pipeline_mode = #tpu.pipeline_mode<synchronous>, transform_indices = @transform_2, window_bounds = array<i64: 2, 16, 8>}, {pipeline_mode = #tpu.pipeline_mode<synchronous>, transform_indices = @transform_3, window_bounds = array<i64: 64, 128>}, {pipeline_mode = #tpu.pipeline_mode<synchronous>, transform_indices = @transform_4, window_bounds = array<i64: 1, 128>}, {pipeline_mode = #tpu.pipeline_mode<synchronous>, transform_indices = @transform_5, window_bounds = array<i64: 32, 34>}, {pipeline_mode = #tpu.pipeline_mode<synchronous>, transform_indices = @transform_6, window_bounds = array<i64: 1, 34>}, {transform_indices = @transform_7, window_bounds = array<i64: 1, 2, 128>}, {pipeline_mode = #tpu.pipeline_mode<synchronous>, transform_indices = @transform_8, window_bounds = array<i64: 2, 16, 8>}]} {
    %c0_i32 = arith.constant 0 : i32
    %0 = arith.cmpi eq, %arg0, %c0_i32 : i32
    %1 = arith.extui %0 : i1 to i32
    %c0_i32_0 = arith.constant 0 : i32
    %2 = arith.cmpi ne, %1, %c0_i32_0 : i32
    scf.if %2 {
      %c0_45 = arith.constant 0 : index
      %c0_46 = arith.constant 0 : index
      %145 = vector.load %arg2[%c0_45, %c0_46] : memref<2x128xf32, #tpu.memory_space<vmem>>, vector<2x128xf32>
      %c0_47 = arith.constant 0 : index
      %c0_48 = arith.constant 0 : index
      %146 = vector.load %arg10[%c0_47, %c0_48] : memref<2x128xf32, #tpu.memory_space<vmem>>, vector<2x128xf32>
      tpu.vector_store %arg10[%c0_47, %c0_48], %145 {strides = array<i32>} : memref<2x128xf32, #tpu.memory_space<vmem>>, vector<2x128xf32>,
      %c0_49 = arith.constant 0 : index
      %c0_50 = arith.constant 0 : index
      %c0_51 = arith.constant 0 : index
      %147 = vector.load %arg3[%c0_49, %c0_50, %c0_51] : memref<2x16x8xf32, #tpu.memory_space<vmem>>, vector<2x16x8xf32>
      %c0_52 = arith.constant 0 : index
      %c0_53 = arith.constant 0 : index
      %c0_54 = arith.constant 0 : index
      %148 = vector.load %arg9[%c0_52, %c0_53, %c0_54] : memref<2x16x8xf32, #tpu.memory_space<vmem>>, vector<2x16x8xf32>
      tpu.vector_store %arg9[%c0_52, %c0_53, %c0_54], %147 {strides = array<i32>} : memref<2x16x8xf32, #tpu.memory_space<vmem>>, vector<2x16x8xf32>,
    } else {
    }
    %c0 = arith.constant 0 : index
    %c0_1 = arith.constant 0 : index
    %3 = vector.load %arg10[%c0, %c0_1] : memref<2x128xf32, #tpu.memory_space<vmem>>, vector<2x128xf32>
    %4 = vector.extract_strided_slice %3 {offsets = [0, 0], sizes = [2, 32], strides = [1, 1]} : vector<2x128xf32> to vector<2x32xf32>
    %5 = vector.extract_strided_slice %3 {offsets = [0, 32], sizes = [2, 32], strides = [1, 1]} : vector<2x128xf32> to vector<2x32xf32>
    %6 = vector.extract_strided_slice %3 {offsets = [0, 64], sizes = [2, 16], strides = [1, 1]} : vector<2x128xf32> to vector<2x16xf32>
    %7 = vector.extract_strided_slice %3 {offsets = [0, 80], sizes = [2, 16], strides = [1, 1]} : vector<2x128xf32> to vector<2x16xf32>
    %8 = vector.extract_strided_slice %3 {offsets = [0, 96], sizes = [2, 32], strides = [1, 1]} : vector<2x128xf32> to vector<2x32xf32>
    %c0_2 = arith.constant 0 : index
    %c0_3 = arith.constant 0 : index
    %c0_4 = arith.constant 0 : index
    %9 = vector.load %arg9[%c0_2, %c0_3, %c0_4] : memref<2x16x8xf32, #tpu.memory_space<vmem>>, vector<2x16x8xf32>
    %c0_5 = arith.constant 0 : index
    %c0_6 = arith.constant 0 : index
    %c0_7 = arith.constant 0 : index
    %10 = vector.load %arg1[%c0_5, %c0_6, %c0_7] : memref<1x2x16xf32, #tpu.memory_space<vmem>>, vector<1x2x16xf32>
    %11 = vector.shape_cast %10 : vector<1x2x16xf32> to vector<2x16xf32>
    %12 = tpu.concatenate %11, %6, %4 in 1 : vector<2x16xf32>, vector<2x16xf32>, vector<2x32xf32> -> vector<2x64xf32>
    %c0_8 = arith.constant 0 : index
    %c0_9 = arith.constant 0 : index
    %13 = vector.load %arg4[%c0_8, %c0_9] : memref<64x128xf32, #tpu.memory_space<vmem>>, vector<64x128xf32>
    %cst = arith.constant dense<0.000000e+00> : vector<2x128xf32>
    %14 = tpu.matmul %12, %13, %cst {dimension_numbers = #tpu.dot_dimension_numbers<[1], [0], [0], [1], [0, 0, 1, 1], [], []>} : vector<2x64xf32>, vector<64x128xf32>, vector<2x128xf32> -> vector<2x128xf32>
    %c0_10 = arith.constant 0 : index
    %c0_11 = arith.constant 0 : index
    %15 = vector.load %arg5[%c0_10, %c0_11] : memref<1x128xf32, #tpu.memory_space<vmem>>, vector<1x128xf32>
    %16 = vector.broadcast %15 : vector<1x128xf32> to vector<2x128xf32>
    %17 = arith.addf %14, %16 : vector<2x128xf32>
    %18 = vector.extract_strided_slice %17 {offsets = [0, 0], sizes = [2, 32], strides = [1, 1]} : vector<2x128xf32> to vector<2x32xf32>
    %19 = arith.negf %18 : vector<2x32xf32>
    %20 = math.exp %19 : vector<2x32xf32>
    %cst_12 = arith.constant 1.000000e+00 : f32
    %21 = vector.broadcast %cst_12 : f32 to vector<2x32xf32>
    %22 = arith.addf %21, %20 : vector<2x32xf32>
    %23 = arith.divf %21, %22 : vector<2x32xf32>
    %24 = vector.extract_strided_slice %17 {offsets = [0, 32], sizes = [2, 32], strides = [1, 1]} : vector<2x128xf32> to vector<2x32xf32>
    %25 = arith.negf %24 : vector<2x32xf32>
    %26 = math.exp %25 : vector<2x32xf32>
    %cst_13 = arith.constant 1.000000e+00 : f32
    %27 = vector.broadcast %cst_13 : f32 to vector<2x32xf32>
    %28 = arith.addf %27, %26 : vector<2x32xf32>
    %29 = arith.divf %27, %28 : vector<2x32xf32>
    %30 = vector.extract_strided_slice %17 {offsets = [0, 64], sizes = [2, 32], strides = [1, 1]} : vector<2x128xf32> to vector<2x32xf32>
    %31 = math.tanh %30 : vector<2x32xf32>
    %32 = vector.extract_strided_slice %17 {offsets = [0, 96], sizes = [2, 32], strides = [1, 1]} : vector<2x128xf32> to vector<2x32xf32>
    %33 = arith.negf %32 : vector<2x32xf32>
    %34 = math.exp %33 : vector<2x32xf32>
    %cst_14 = arith.constant 1.000000e+00 : f32
    %35 = vector.broadcast %cst_14 : f32 to vector<2x32xf32>
    %36 = arith.addf %35, %34 : vector<2x32xf32>
    %37 = arith.divf %35, %36 : vector<2x32xf32>
    %38 = arith.mulf %29, %5 : vector<2x32xf32>
    %39 = arith.mulf %23, %31 : vector<2x32xf32>
    %40 = arith.addf %38, %39 : vector<2x32xf32>
    %41 = math.tanh %40 : vector<2x32xf32>
    %42 = arith.mulf %37, %41 : vector<2x32xf32>
    %c0_15 = arith.constant 0 : index
    %c0_16 = arith.constant 0 : index
    %43 = vector.load %arg6[%c0_15, %c0_16] : memref<32x34xf32, #tpu.memory_space<vmem>>, vector<32x34xf32>
    %cst_17 = arith.constant dense<0.000000e+00> : vector<2x34xf32>
    %44 = tpu.matmul %42, %43, %cst_17 {dimension_numbers = #tpu.dot_dimension_numbers<[1], [0], [0], [1], [0, 0, 1, 1], [], []>} : vector<2x32xf32>, vector<32x34xf32>, vector<2x34xf32> -> vector<2x34xf32>
    %c0_18 = arith.constant 0 : index
    %c0_19 = arith.constant 0 : index
    %45 = vector.load %arg7[%c0_18, %c0_19] : memref<1x34xf32, #tpu.memory_space<vmem>>, vector<1x34xf32>
    %46 = vector.broadcast %45 : vector<1x34xf32> to vector<2x34xf32>
    %47 = arith.addf %44, %46 : vector<2x34xf32>
    %48 = vector.extract_strided_slice %47 {offsets = [0, 0], sizes = [2, 16], strides = [1, 1]} : vector<2x34xf32> to vector<2x16xf32>
    %49 = math.tanh %48 : vector<2x16xf32>
    %50 = vector.shape_cast %49 : vector<2x16xf32> to vector<2x2x8xf32>
    %51 = vector.extract_strided_slice %47 {offsets = [0, 16], sizes = [2, 16], strides = [1, 1]} : vector<2x34xf32> to vector<2x16xf32>
    %52 = math.tanh %51 : vector<2x16xf32>
    %53 = vector.shape_cast %52 : vector<2x16xf32> to vector<2x2x8xf32>
    %54 = vector.extract_strided_slice %47 {offsets = [0, 32], sizes = [2, 2], strides = [1, 1]} : vector<2x34xf32> to vector<2x2xf32>
    %55 = arith.negf %54 : vector<2x2xf32>
    %56 = math.exp %55 : vector<2x2xf32>
    %cst_20 = arith.constant 1.000000e+00 : f32
    %57 = vector.broadcast %cst_20 : f32 to vector<2x2xf32>
    %58 = arith.addf %57, %56 : vector<2x2xf32>
    %59 = arith.divf %57, %58 : vector<2x2xf32>
    %60 = vector.shape_cast %7 : vector<2x16xf32> to vector<2x16x1xf32>
    %61 = vector.shape_cast %7 : vector<2x16xf32> to vector<2x1x16xf32>
    %62 = tpu.iota {dimensions = array<i32: 1>} : vector<1x16x16xi32>
    %63 = tpu.iota {dimensions = array<i32: 2>} : vector<1x16x16xi32>
    %64 = vector.broadcast %61 : vector<2x1x16xf32> to vector<2x16x16xf32>
    %65 = vector.broadcast %60 : vector<2x16x1xf32> to vector<2x16x16xf32>
    %66 = arith.cmpf ogt, %64, %65 : vector<2x16x16xf32>
    %67 = vector.broadcast %61 : vector<2x1x16xf32> to vector<2x16x16xf32>
    %68 = vector.broadcast %60 : vector<2x16x1xf32> to vector<2x16x16xf32>
    %69 = arith.cmpf oeq, %67, %68 : vector<2x16x16xf32>
    %70 = arith.cmpi slt, %63, %62 : vector<1x16x16xi32>
    %71 = vector.broadcast %70 : vector<1x16x16xi1> to vector<2x16x16xi1>
    %72 = arith.andi %69, %71 : vector<2x16x16xi1>
    %73 = arith.ori %66, %72 : vector<2x16x16xi1>
    %74 = arith.extui %73 : vector<2x16x16xi1> to vector<2x16x16xi32>
    %75 = arith.sitofp %74 : vector<2x16x16xi32> to vector<2x16x16xf32>
    %cst_21 = arith.constant dense<0.000000e+00> : vector<2x16xf32>
    %76 = vector.multi_reduction <add>, %75, %cst_21 [2] : vector<2x16x16xf32> to vector<2x16xf32>
    %cst_22 = arith.constant 1.400000e+01 : f32
    %77 = vector.broadcast %cst_22 : f32 to vector<2x16xf32>
    %78 = arith.cmpf oge, %76, %77 : vector<2x16xf32>
    %79 = arith.extui %78 : vector<2x16xi1> to vector<2x16xi32>
    %80 = arith.sitofp %79 : vector<2x16xi32> to vector<2x16xf32>
    %cst_23 = arith.constant 1.500000e+01 : f32
    %81 = vector.broadcast %cst_23 : f32 to vector<2x16xf32>
    %82 = arith.cmpf oeq, %76, %81 : vector<2x16xf32>
    %83 = arith.extui %82 : vector<2x16xi1> to vector<2x16xi32>
    %84 = arith.sitofp %83 : vector<2x16xi32> to vector<2x16xf32>
    "tpu.trace_start"() <{level = 10 : i32, message = "brd,bnd->brn"}> : () -> ()
    %cst_24 = arith.constant dense<0.000000e+00> : vector<2x2x16xf32>
    %85 = tpu.matmul %50, %9, %cst_24 {dimension_numbers = #tpu.dot_dimension_numbers<[2], [2], [1], [1], [0, 0, 0, 1, 1, 1], [0], [0]>} : vector<2x2x8xf32>, vector<2x16x8xf32>, vector<2x2x16xf32> -> vector<2x2x16xf32>
    "tpu.trace_stop"() : () -> ()
    %86 = arith.mulf %50, %50 : vector<2x2x8xf32>
    %cst_25 = arith.constant dense<0.000000e+00> : vector<2x2xf32>
    %87 = vector.multi_reduction <add>, %86, %cst_25 [2] : vector<2x2x8xf32> to vector<2x2xf32>
    %88 = arith.mulf %9, %9 : vector<2x16x8xf32>
    %cst_26 = arith.constant dense<0.000000e+00> : vector<2x16xf32>
    %89 = vector.multi_reduction <add>, %88, %cst_26 [2] : vector<2x16x8xf32> to vector<2x16xf32>
    %90 = vector.shape_cast %87 : vector<2x2xf32> to vector<2x2x1xf32>
    %91 = vector.shape_cast %89 : vector<2x16xf32> to vector<2x1x16xf32>
    %92 = vector.broadcast %90 : vector<2x2x1xf32> to vector<2x2x16xf32>
    %93 = vector.broadcast %91 : vector<2x1x16xf32> to vector<2x2x16xf32>
    %94 = arith.mulf %92, %93 : vector<2x2x16xf32>
    %95 = math.sqrt %94 : vector<2x2x16xf32>
    %cst_27 = arith.constant 9.99999993E-9 : f32
    %96 = vector.broadcast %cst_27 : f32 to vector<2x2x16xf32>
    %97 = arith.addf %95, %96 : vector<2x2x16xf32>
    %98 = tpu.reciprocal %97 {approx = true} : vector<2x2x16xf32> -> vector<2x2x16xf32>
    %99 = arith.mulf %85, %98 : vector<2x2x16xf32>
    %cst_28 = arith.constant dense<0xFF800000> : vector<2x2xf32>
    %100 = vector.multi_reduction <maximumf>, %99, %cst_28 [2] : vector<2x2x16xf32> to vector<2x2xf32>
    %101 = vector.shape_cast %100 : vector<2x2xf32> to vector<2x2x1xf32>
    %102 = vector.broadcast %101 : vector<2x2x1xf32> to vector<2x2x16xf32>
    %103 = arith.subf %99, %102 : vector<2x2x16xf32>
    %104 = math.exp %103 : vector<2x2x16xf32>
    %cst_29 = arith.constant dense<0.000000e+00> : vector<2x2xf32>
    %105 = vector.multi_reduction <add>, %104, %cst_29 [2] : vector<2x2x16xf32> to vector<2x2xf32>
    %106 = vector.shape_cast %105 : vector<2x2xf32> to vector<2x2x1xf32>
    %107 = tpu.reciprocal %106 {approx = true} : vector<2x2x1xf32> -> vector<2x2x1xf32>
    %108 = vector.broadcast %107 : vector<2x2x1xf32> to vector<2x2x16xf32>
    %109 = arith.mulf %104, %108 : vector<2x2x16xf32>
    %110 = vector.shape_cast %8 : vector<2x32xf32> to vector<2x2x16xf32>
    %111 = vector.shape_cast %59 : vector<2x2xf32> to vector<2x2x1xf32>
    %112 = vector.broadcast %111 : vector<2x2x1xf32> to vector<2x2x16xf32>
    %113 = arith.mulf %112, %110 : vector<2x2x16xf32>
    %114 = vector.shape_cast %59 : vector<2x2xf32> to vector<2x2x1xf32>
    %cst_30 = arith.constant 1.000000e+00 : f32
    %115 = vector.broadcast %cst_30 : f32 to vector<2x2x1xf32>
    %116 = arith.subf %115, %114 : vector<2x2x1xf32>
    %117 = vector.shape_cast %80 : vector<2x16xf32> to vector<2x1x16xf32>
    %118 = vector.broadcast %116 : vector<2x2x1xf32> to vector<2x2x16xf32>
    %119 = vector.broadcast %117 : vector<2x1x16xf32> to vector<2x2x16xf32>
    %120 = arith.mulf %118, %119 : vector<2x2x16xf32>
    %121 = arith.addf %113, %120 : vector<2x2x16xf32>
    %cst_31 = arith.constant 0.949999988 : f32
    %122 = vector.broadcast %cst_31 : f32 to vector<2x16xf32>
    %123 = arith.mulf %122, %7 : vector<2x16xf32>
    %cst_32 = arith.constant dense<0.000000e+00> : vector<2x16xf32>
    %124 = vector.multi_reduction <add>, %109, %cst_32 [1] : vector<2x2x16xf32> to vector<2x16xf32>
    %125 = arith.addf %123, %124 : vector<2x16xf32>
    %cst_33 = arith.constant dense<0.000000e+00> : vector<2x16xf32>
    %126 = vector.multi_reduction <add>, %121, %cst_33 [1] : vector<2x2x16xf32> to vector<2x16xf32>
    %127 = arith.addf %125, %126 : vector<2x16xf32>
    %cst_34 = arith.constant 1.000000e+00 : f32
    %128 = vector.broadcast %cst_34 : f32 to vector<2x16xf32>
    %129 = arith.subf %128, %84 : vector<2x16xf32>
    %130 = vector.shape_cast %129 : vector<2x16xf32> to vector<2x16x1xf32>
    %131 = vector.broadcast %130 : vector<2x16x1xf32> to vector<2x16x8xf32>
    %132 = arith.mulf %9, %131 : vector<2x16x8xf32>
    %133 = tpu.transpose %121, [0, 2, 1] : vector<2x2x16xf32> -> vector<2x16x2xf32>
    "tpu.trace_start"() <{level = 10 : i32, message = "bnr,brd->bnd"}> : () -> ()
    %cst_35 = arith.constant dense<0.000000e+00> : vector<2x16x8xf32>
    %134 = tpu.matmul %133, %53, %cst_35 {dimension_numbers = #tpu.dot_dimension_numbers<[2], [1], [1], [2], [0, 0, 0, 1, 1, 2], [0], [0]>} : vector<2x16x2xf32>, vector<2x2x8xf32>, vector<2x16x8xf32> -> vector<2x16x8xf32>
    "tpu.trace_stop"() : () -> ()
    %135 = arith.addf %132, %134 : vector<2x16x8xf32>
    "tpu.trace_start"() <{level = 10 : i32, message = "brn,bnd->brd"}> : () -> ()
    %cst_36 = arith.constant dense<0.000000e+00> : vector<2x2x8xf32>
    %136 = tpu.matmul %109, %135, %cst_36 {dimension_numbers = #tpu.dot_dimension_numbers<[2], [1], [1], [2], [0, 0, 0, 1, 1, 2], [0], [0]>} : vector<2x2x16xf32>, vector<2x16x8xf32>, vector<2x2x8xf32> -> vector<2x2x8xf32>
    "tpu.trace_stop"() : () -> ()
    %137 = vector.shape_cast %136 : vector<2x2x8xf32> to vector<2x16xf32>
    %138 = vector.shape_cast %109 : vector<2x2x16xf32> to vector<2x32xf32>
    %139 = tpu.concatenate %42, %40, %137, %127, %138 in 1 : vector<2x32xf32>, vector<2x32xf32>, vector<2x16xf32>, vector<2x16xf32>, vector<2x32xf32> -> vector<2x128xf32>
    %c0_37 = arith.constant 0 : index
    %c0_38 = arith.constant 0 : index
    %140 = vector.load %arg10[%c0_37, %c0_38] : memref<2x128xf32, #tpu.memory_space<vmem>>, vector<2x128xf32>
    tpu.vector_store %arg10[%c0_37, %c0_38], %139 {strides = array<i32>} : memref<2x128xf32, #tpu.memory_space<vmem>>, vector<2x128xf32>,
    %c0_39 = arith.constant 0 : index
    %c0_40 = arith.constant 0 : index
    %c0_41 = arith.constant 0 : index
    %141 = vector.load %arg8[%c0_39, %c0_40, %c0_41] : memref<1x2x128xf32, #tpu.memory_space<vmem>>, vector<1x2x128xf32>
    %142 = vector.shape_cast %141 : vector<1x2x128xf32> to vector<2x128xf32>
    %143 = vector.shape_cast %139 : vector<2x128xf32> to vector<1x2x128xf32>
    tpu.vector_store %arg8[%c0_39, %c0_40, %c0_41], %143 {strides = array<i32>} : memref<1x2x128xf32, #tpu.memory_space<vmem>>, vector<1x2x128xf32>,
    %c0_42 = arith.constant 0 : index
    %c0_43 = arith.constant 0 : index
    %c0_44 = arith.constant 0 : index
    %144 = vector.load %arg9[%c0_42, %c0_43, %c0_44] : memref<2x16x8xf32, #tpu.memory_space<vmem>>, vector<2x16x8xf32>
    tpu.vector_store %arg9[%c0_42, %c0_43, %c0_44], %135 {strides = array<i32>} : memref<2x16x8xf32, #tpu.memory_space<vmem>>, vector<2x16x8xf32>,
    return
  }
  func.func @transform_0(%arg0: i32) -> (i32, i32, i32) {
    %c0_i32 = arith.constant 0 : i32
    %c0_i32_0 = arith.constant 0 : i32
    %c0_i32_1 = arith.constant 0 : i32
    return %arg0, %c0_i32, %c0_i32_0 : i32, i32, i32
  }
  func.func @transform_1(%arg0: i32) -> (i32, i32) {
    %c0_i32 = arith.constant 0 : i32
    %c0_i32_0 = arith.constant 0 : i32
    %c0_i32_1 = arith.constant 0 : i32
    return %c0_i32, %c0_i32_0 : i32, i32
  }
  func.func @transform_2(%arg0: i32) -> (i32, i32, i32) {
    %c0_i32 = arith.constant 0 : i32
    %c0_i32_0 = arith.constant 0 : i32
    %c0_i32_1 = arith.constant 0 : i32
    %c0_i32_2 = arith.constant 0 : i32
    return %c0_i32, %c0_i32_0, %c0_i32_1 : i32, i32, i32
  }
  func.func @transform_3(%arg0: i32) -> (i32, i32) {
    %c0_i32 = arith.constant 0 : i32
    %c0_i32_0 = arith.constant 0 : i32
    %c0_i32_1 = arith.constant 0 : i32
    return %c0_i32, %c0_i32_0 : i32, i32
  }
  func.func @transform_4(%arg0: i32) -> (i32, i32) {
    %c0_i32 = arith.constant 0 : i32
    %c0_i32_0 = arith.constant 0 : i32
    %c0_i32_1 = arith.constant 0 : i32
    return %c0_i32, %c0_i32_0 : i32, i32
  }
  func.func @transform_5(%arg0: i32) -> (i32, i32) {
    %c0_i32 = arith.constant 0 : i32
    %c0_i32_0 = arith.constant 0 : i32
    %c0_i32_1 = arith.constant 0 : i32
    return %c0_i32, %c0_i32_0 : i32, i32
  }
  func.func @transform_6(%arg0: i32) -> (i32, i32) {
    %c0_i32 = arith.constant 0 : i32
    %c0_i32_0 = arith.constant 0 : i32
    %c0_i32_1 = arith.constant 0 : i32
    return %c0_i32, %c0_i32_0 : i32, i32
  }
  func.func @transform_7(%arg0: i32) -> (i32, i32, i32) {
    %c0_i32 = arith.constant 0 : i32
    %c0_i32_0 = arith.constant 0 : i32
    %c0_i32_1 = arith.constant 0 : i32
    return %arg0, %c0_i32, %c0_i32_0 : i32, i32, i32
  }
  func.func @transform_8(%arg0: i32) -> (i32, i32, i32) {
    %c0_i32 = arith.constant 0 : i32
    %c0_i32_0 = arith.constant 0 : i32
    %c0_i32_1 = arith.constant 0 : i32
    %c0_i32_2 = arith.constant 0 : i32
    return %c0_i32, %c0_i32_0, %c0_i32_1 : i32, i32, i32
  }
}

</mosaic_0001>

<bundles_post_ra>
// kernel: tpu_custom_call.1
= control target key start
LH: loop header
LB: loop body
LE: loop exit
PB: predicated region body
PF: predicated region fallthrough
CT: control target
= control target key end

     0   :  { %s2494_s0 = inlined_call_operand.vmem [shape: f32[8,2,16], index: 0, kind: input, shape index: {}]   ;;  %s2495_s1 = inlined_call_operand.vmem [shape: f32[2,128], index: 1, kind: input, shape index: {}]   ;;  %s2496_s2 = inlined_call_operand.vmem [shape: f32[2,16,8], index: 2, kind: input, shape index: {}]   ;;  %s2497_s3 = inlined_call_operand.hbm [shape: f32[64,128], index: 3, kind: input, shape index: {}]   ;;  %s2498_s4 = inlined_call_operand.vmem [shape: f32[1,128], index: 4, kind: input, shape index: {}]   ;;  %s2499_s5 = inlined_call_operand.vmem [shape: f32[32,34], index: 5, kind: input, shape index: {}]   ;;  %s2500_s6 = inlined_call_operand.vmem [shape: f32[1,34], index: 6, kind: input, shape index: {}]   ;;  %s2501_s7 = inlined_call_operand.hbm [shape: f32[8,2,128], index: 7, kind: output, shape index: {0}]   ;;  %s2502_s8 = inlined_call_operand.vmem [shape: f32[2,16,8], index: 8, kind: output, shape index: {1}]  }
   0x1   :  { %2504 = sst [smem:[#allocation9_spill]] %s2494_s0 }
   0x2   :  { %14 = vsyncpa [#allocation4], 0 }
   0x3   :  { %15 = vsyncpa [#allocation5], 0 }
   0x4   :  { %17 = vsyncpa [#allocation5 + $0x1], 0  ;;  %s2030_s27 = smov 0   ;;  %s2032_s28 = smov 0  }
   0x5   :  { %s2034_s29 = smov 0   ;;  %s2036_s30 = smov 0  }
   0x6 LB: > { %s2051_s9 = sadd.s32 4294967295, %s1965_s30   ;;  %s1624_s10 = sadd.s32 4294967294, %s1965_s30   ;;  %s1965_s30 = sphi %s2036_s30, %s2517_s30   ;;  %s1961_s29 = sphi %s2034_s29, %s2516_s29   ;;  %s1957_s28 = sphi %s2032_s28, %s2515_s28   ;;  %s1953_s27 = sphi %s2030_s27, %s2514_s27  }
   0x7   : > { %s2055_s11 = sadd.s32 1, %s1965_s30   ;;  %s182_s12 = sadd.s32 1, %s1961_s29 }
   0x8   : > { %s179_s13 = ssub.s32 %s1965_s30, %s2055_s11  ;;  %p192_p0 = scmp.ne.s32.totalorder %s1961_s29, %s1957_s28 }
   0x9   : > { %p180_p1 = scmp.eq.s32.totalorder %s179_s13, 0  ;;  %p193_p2 = scmp.eq.s32.totalorder %s2051_s9, 7 }
   0xa   : > { %p198_p3 = scmp.ne.s32.totalorder %s1957_s28, %s1953_s27  ;;  %p199_p4 = scmp.eq.s32.totalorder %s1624_s10, 7 }
   0xb   : > { %s2066_s14 = scalar_select %p180_p1, %s1961_s29, %s182_s12  }
   0xc   : > { %p2068_p5 = por %p193_p2, %p192_p0  ;;  %p2072_p6 = por %p199_p4, %p198_p3 }
   0xd   : > { %p1625_p7 = scmp.ge.s32.totalorder %s1965_s30, 1  ;;  %p227_p8 = scmp.lt.s32.totalorder %s1965_s30, 9 }
   0xe   : > { %s2506_s16 = scalar_select %p2072_p6, 1, 0 }
   0xf   : > { %p1783_p10 = scmp.eq.s32.totalorder %s2051_s9, 0  ;;  %p2080_p11 = pnand %p1625_p7, %p227_p8 }
  0x10   : > { %s1967_s18 = smov [#allocation3]  }
  0x11   : > { %s245_s19 = sshll.u32 %s1967_s18, 4  ;;  %p1775_p12 = pneg %p2080_p11  ;;  %s246_s19 = int_to_ptr.vmem [resolvable:$true] %s245_s19 }
  0x12   : > { %s1886_s20 = scalar_lea.vmem %s246_s19, 1024  ;;  %p1894_p4 = scmp.lt.s32.totalorder %s246_s19, %s246_s19 }
  0x13   : > { %p1776_p13 = pnand %p1783_p10, %p1775_p12  ;;  %p1887_p1 = scmp.ne.s32.totalorder %s246_s19, %s1886_s20 }
  0x14   : > { %p1895_p9 = scmp.lt.s32.totalorder %s1886_s20, %s1886_s20 }
  0x15   : > { %p1877_p0 = pneg %p1776_p13 }
  0x16   : > { %p1896_p6 = por %p1895_p9, %p1894_p4 }
  0x17   : > { %p1889_p2 = pnand %p1887_p1, %p1877_p0 }
  0x19   : > { %p1890_p3 = pneg %p1889_p2 }
  0x1b   : > { %p1897_p7 = pnand %p1896_p6, %p1890_p3 }
  0x1d   : > { %1900 = shalt.err (!%p1897_p7)
}
  0x1e   : > { %s1968_s21 = smov 128   ;;  %s1969_s22 = smov 8  }
  0x1f   : > { %1778 = dma.hbm_to_vmem [thread:$0]  (!%p1776_p13), %s2497_s3, 1024, %s246_s19, [#allocation4], %s1968_s21, %s1968_s21, %s1969_s22  }
  0x20   : > { %277 = sbr.rel (%p2080_p11) target bundleno = 2317 (0x90d), region = 48 }
  0x25   : > { %1944 = dma.done.wait (%p1783_p10), [#allocation4], 1024  }
  0x26   : > { %1946 = vsyncadd (%p1783_p10), [#allocation4], 4294966272  ;;  %s2503_s25 = sand.u32 1, %s1957_s28   ;;  %p310_p6 = scmp.lt.s32.totalorder %s2051_s9, 7 }
  0x27   : > { %s2101_s26 = sshll.u32 %s2503_s25, 1  ;;  %s2508_s0 = sld [smem:[#allocation9_spill]] }
  0x28   : > { %s311_s10 = scalar_select %p310_p6, %s2051_s9, 7 }
  0x29   : > { %p2509_p8 = scmp.ne.s32.totalorder %s2051_s9, 0 }
  0x2a   : > { %s1631_s12 = sshll.u32 %s311_s10, 1 }
  0x2b   : > { %317 = sbr.rel (%p2509_p8) target bundleno = 52 (0x34), region = 56 }
  0x2d   : > { %s2107_s18 = scalar_lea.vmem %s2508_s0, %s1631_s12 }
  0x30   : > { %v318_v0 = vld [vmem:[%s2495_s1] sm:$0x3]  ;;  %vm324_vm0 = vcmask 64512   ;;  %v321_v2 = vld [vmem:[%s2496_s2 + $0x8] sm:$0xff]  ;;  %v322_v3 = vld [vmem:[%s2496_s2 + $0x10] sm:$0xff] }
  0x31   : > { %v320_v1 = vld [vmem:[%s2496_s2] sm:$0xff]  ;;  %319 = vst [vmem:[#allocation2] sm:$0x3] %v318_v0  ;;  %326 = vst.msk [vmem:[%s2502_s8 + $0x8] sm:$0xff] %vm324_vm0, %v321_v2  ;;  %v323_v4 = vld [vmem:[%s2496_s2 + $0x18] sm:$0xff] }
  0x32   : > { %325 = vst.msk [vmem:[%s2502_s8] sm:$0xff] %vm324_vm0, %v320_v1  ;;  %327 = vst.msk [vmem:[%s2502_s8 + $0x10] sm:$0xff] %vm324_vm0, %v322_v3 }
  0x33   : > { %328 = vst.msk [vmem:[%s2502_s8 + $0x18] sm:$0xff] %vm324_vm0, %v323_v4 }
  0x34 PF: > { %v353_v6 = vld [vmem:[#allocation3 + $0x38] sm:$0xff]  ;;  %s1970_s25 = smov 80   ;;  %v1971_v7 = vmov 0.0   ;;  %v352_v8 = vld [vmem:[#allocation3 + $0x30] sm:$0xff]  ;;  %vm1972_vm1 = vmmov 0   ;;  %v351_v9 = vld [vmem:[#allocation3 + $0x28] sm:$0xff]  ;;  %v554_v34 = vlaneseq }
  0x35   : > { %1701 = vmatprep.subr.mxu0 %v1971_v7  ;;  %1717 = vmatprep.mubr.msk.f32.mxu0 %vm1972_vm1, %v1971_v7  ;;  %s1973_s0 = smov 32   ;;  %v350_v10 = vld [vmem:[#allocation3 + $0x20] sm:$0xff]  ;;  %v349_v11 = vld [vmem:[#allocation3 + $0x18] sm:$0xff]  ;;  %v348_v12 = vld [vmem:[#allocation3 + $0x10] sm:$0xff]  ;;  %vm342_vm2 = vcmask 130048   ;;  %vm344_vm3 = vcmask 261120  }
  0x36   : > { %1702 = vmatpush3.msra.mxu0 %v353_v6  ;;  %1720 = vmatprep.subr.mxu1 %v1971_v7  ;;  %v347_v13 = vld [vmem:[#allocation3 + $0x8] sm:$0xff]  ;;  %v346_v14 = vld [vmem:[#allocation3] sm:$0xff]  ;;  %v334_v16 = vld [vmem:[%s2107_s18] sm:$0x3]  ;;  %vm361_vm4 = vcmask 523264   ;;  %s1974_s18 = smov 64  }
  0x37   : > { %1703 = vmatprep.subr.mxu0 %v1971_v7  ;;  %1728 = vmatprep.mubr.msk.f32.mxu1 %vm1972_vm1, %v1971_v7  ;;  %v1633_v20 = vld [vmem:[%s2498_s4] ss:$0 sm:$0xff]  ;;  %v2177_v35 = vshrl.u32 %v554_v34, 7  ;;  %v462_v37 = vld [vmem:[%s2499_s5 + $0x18] sm:$0xff]  ;;  %v461_v38 = vld [vmem:[%s2499_s5 + $0x10] sm:$0xff]  ;;  %v2188_v39 = vand.u32 127, %v554_v34 }
  0x38   : > { %v2139_v5 = vld [vmem:[#allocation2] sm:$0x3]  ;;  %1704 = vmatpush3.msra.mxu0 %v352_v8  ;;  %1721 = vmatpush3.msra.mxu1 %v462_v37  ;;  %v460_v41 = vld [vmem:[%s2499_s5 + $0x8] sm:$0xff]  ;;  %v1975_v44 = vmov 0   ;;  %v1976_v46 = vmov 1966171168  }
  0x39   : > { %336 = vrot.lane.b32.xlu0 %v2139_v5, %s1970_s25  ;;  %1705 = vmatprep.subr.mxu0 %v1971_v7  ;;  %v2180_v36 = vsub.s32 0, %v2177_v35  ;;  %v459_v43 = vld [vmem:[%s2499_s5] sm:$0xff]  ;;  %vm649_vm5 = vcmp.lt.s32.totalorder %v2188_v39, %v2177_v35  ;;  %v605_v47 = vunpack.c.l.s4 %v1976_v46  ;;  %v628_v51 = vadd.s32 8, %v2177_v35  ;;  %s1977_s19 = smov 48   ;;  %s1978_s12 = smov 112  }
  0x3a   : > { %1706 = vmatpush3.msra.mxu0 %v351_v9  ;;  %1722 = vmatprep.subr.mxu1 %v1971_v7  ;;  %v655_v45 = vsel %vm649_vm5, 1, %v1975_v44  ;;  %v594_v54 = vsub.s32 1, %v2177_v35  ;;  %vm731_vm5 = vcmask 64512   ;;  %v2246_v6 = vld [vmem:[%s2502_s8 + $0x18] sm:$0xff]  ;;  %s1979_s17 = smov 120   ;;  %s1981_s10 = smov 16  }
  0x3b   : > { %1707 = vmatprep.subr.mxu0 %v1971_v7  ;;  %v583_v42 = vrot.slane %v2139_v5, %v2180_v36  ;;  %1723 = vmatpush3.msra.mxu1 %v461_v38  ;;  %v606_v48 = vunpack.c.0.s8 %v605_v47  ;;  %vm650_vm6 = vcmp.lt.s32.totalorder %v2188_v39, %v628_v51  ;;  %s1982_s13 = smov 8   ;;  %s2512_s22 = sand.u32 1, %s1957_s28  }
  0x3c   : > { %1708 = vmatpush3.msra.mxu0 %v350_v10  ;;  %1724 = vmatprep.subr.mxu1 %v1971_v7  ;;  %v656_v55 = vsel %vm650_vm6, 1, %v1975_v44  ;;  %v2218_v58 = vrot.slane %v2139_v5, %v594_v54  ;;  %s1534_s23 = scalar_lea.sflag [#allocation5], %s2512_s22  ;;  %s1984_s24 = smov [#allocation6]  }
  0x3d   : > { %339 = vrot.lane.b32.xlu0 %v2139_v5, %s1973_s0  ;;  %1709 = vmatprep.subr.mxu0 %v1971_v7  ;;  %v609_v52 = vsub.s32 %v606_v48, %v2177_v35 }
  0x3e   : > { %1710 = vmatpush3.msra.mxu0 %v349_v11  ;;  %1725 = vmatpush3.msra.mxu1 %v460_v41 }
  0x3f   : > { %1711 = vmatprep.subr.mxu0 %v1971_v7  ;;  %1726 = vmatprep.subr.mxu1 %v1971_v7  ;;  %v610_v53 = vrot.slane %v2139_v5, %v609_v52 }
  0x40   : > { %1712 = vmatpush3.msra.mxu0 %v348_v12  ;;  %1727 = vmatpush3.msra.mxu1 %v459_v43 }
  0x41   : > { %1713 = vmatprep.subr.mxu0 %v1971_v7  ;;  %1731 = vmatprep.subr.mxu1 %v1971_v7  ;;  %v611_v56 = vcombine.high %v610_v53, %v610_v53  ;;  %v618_v60 = vrot.slane %v610_v53, %v609_v52 }
  0x42   : > { %1714 = vmatpush3.msra.mxu0 %v347_v13  ;;  %v2258_v13 = vld [vmem:[%s2502_s8 + $0x8] sm:$0xff] }
  0x43   : > { %1715 = vmatprep.subr.mxu0 %v1971_v7  ;;  %v2212_v57 = vrot.slane %v611_v56, %v609_v52  ;;  %v634_v61 = vrot.slane %v618_v60, %v2180_v36 }
  0x44   : > { %1716 = vmatpush3.msra.mxu0 %v346_v14  ;;  %v2267_v14 = vld [vmem:[%s2502_s8] sm:$0xff] }
  0x45   : > { %1738 = vmatprep.subr.mxu0 %v1971_v7  ;;  %v638_v34 = vrot.slane %v2212_v57, %v2180_v36 }
  0xab   : > { %v337_v15 = vpop.permute.xlu0 %336 }
  0xac   : > { %v343_v17 = vsel %vm342_vm2, %v334_v16, %v337_v15  ;;  %v899_v15 = vmul.f32 %v2267_v14, %v2267_v14 }
  0xae   : > { %v903_v16 = vsel %vm731_vm5, %v899_v15, 0.0 }
  0xaf   : > { %v2161_v18 = vpop.permute.xlu0 %339 }
  0xb0   : > { %v345_v19 = vsel %vm344_vm3, %v343_v17, %v2161_v18  ;;  %v902_v17 = vmul.f32 %v2246_v6, %v2246_v6 }
  0xb1   : > { %1718 = vmatmul.mubr.msk.f32.vlgmr.msra.gmra.mxu0 %vm361_vm4, %v345_v19 }
  0xb2   : > { %1742 = vmatprep.mubr.msk.f32.mxu0 %vm1972_vm1, %v1971_v7  ;;  %1739 = vmatpush3.xpose.msk.msra.mxu0 %vm731_vm5, %v2246_v6  ;;  %v912_v19 = vsel %vm731_vm5, %v902_v17, 0.0 }
  0xb3   : > { %1740 = vmatprep.subr.mxu0 %v1971_v7 }
 0x171   : > { %v431_v21 = vpop.f32.mrf.mxu0 }
 0x172   : > { %v432_v22 = vadd.f32 %v1633_v20, %v431_v21  ;;  %v1636_v20 = vld [vmem:[%s2500_s6] ss:$0 sm:$0xff] }
 0x173   : > { %v1719_v23 = vpop.f32.mrf.mxu0 }
 0x174   : > { %1845 = vtanh.f32 %v432_v22  ;;  %v1635_v25 = vmul.f32 -1.442695, %v432_v22 }
 0x176   : > { %1847 = vpow2.f32 %v1635_v25  ;;  %v2283_v25 = vld [vmem:[%s2502_s8 + $0x10] sm:$0xff] }
 0x177   : > { %1741 = vmatpush3.xpose.msk.msra.mxu0 %vm731_vm5, %v2283_v25 }
 0x178   : > { %1755 = vmatprep.subr.mxu0 %v1971_v7 }
 0x181   : > { %v1846_v24 = vpop.eup %1845 }
 0x182   : > { %444 = vrot.lane.b32.xlu1 %v1846_v24, %s1974_s18 }
 0x183   : > { %v1848_v26 = vpop.eup %1847 }
 0x184   : > { %v438_v27 = vadd.f32 1.0, %v1848_v26 }
 0x186   : > { %1849 = vrcp.f32 %v438_v27 }
 0x193   : > { %v1850_v28 = vpop.eup %1849 }
 0x194   : > { %v442_v31 = vmul.f32 %v1850_v28, %v2139_v5 }
 0x1f4   : > { %v445_v29 = vpop.permute.xlu1 %444 }
 0x1f5   : > { %v447_v30 = vmul.f32 %v1850_v28, %v445_v29 }
 0x1f7   : > { %449 = vrot.lane.b32.xlu1 %v447_v30, %s1973_s0 }
 0x269   : > { %v450_v32 = vpop.permute.xlu1 %449 }
 0x26a   : > { %v2174_v33 = vadd.f32 %v450_v32, %v442_v31  ;;  %v1980_v31 = vmov 1934713408  }
 0x26b   : > { %v552_v32 = vunpack.c.l.s4 %v1980_v31 }
 0x26c   : > { %1851 = vtanh.f32 %v2174_v33 }
 0x26d   : > { %v553_v37 = vunpack.c.0.s8 %v552_v32 }
 0x279   : > { %v1852_v40 = vpop.eup %1851 }
 0x27a   : > { %455 = vrot.lane.b32.xlu0 %v1852_v40, %s1974_s18  ;;  %v2297_v40 = vsub.s32 %v553_v37, %v2177_v35 }
 0x27e   : > { %586 = vbcast.lane.b32.xlu0 %v583_v42, 336 }
 0x282   : > { %657 = vrot.lane.b32.xlu0 %v655_v45, %s1970_s25 }
 0x2ec   : > { %v456_v49 = vpop.permute.xlu0 %455 }
 0x2ed   : > { %v458_v50 = vmul.f32 %v1850_v28, %v456_v49 }
 0x2ef   : > { %471 = vrot.lane.b32.xlu1 %v458_v50, %s1973_s0 }
 0x2f0   : > { %v587_v59 = vpop.permute.xlu0 %586 }
 0x2f1   : > { %vm645_vm7 = vcmp.eq.f32.partialorder %v634_v61, %v587_v59  ;;  %vm641_vm9 = vcmp.gt.f32.partialorder %v634_v61, %v587_v59 }
 0x2f3   : > { %590 = vbcast.lane.b32.xlu1 %v583_v42, 344 }
 0x2f4   : > { %v2222_v62 = vpop.permute.xlu0 %657 }
 0x2f5   : > { %vm661_vm8 = vcmp.ne.s32.totalorder %v2222_v62, 0 }
 0x2f6   : > { %vm663_vm10 = vmand %vm645_vm7, %vm661_vm8 }
 0x2f7   : > { %659 = vrot.lane.b32.xlu1 %v656_v55, %s1970_s25  ;;  %vm667_vm12 = vmor %vm641_vm9, %vm663_vm10 }
 0x2f8   : > { %v1639_v2 = vsel %vm667_vm12, 1.0, %v1971_v7 }
 0x2fb   : > { %598 = vbcast.lane.b32.xlu1 %v2218_v58, 336 }
 0x361   : > { %v2224_v63 = vpop.permute.xlu1 %471 }
 0x362   : > { %1729 = vmatmul.mubr.msk.f32.vlgmr.msra.gmra.mxu1 %vm344_vm3, %v2224_v63 }
 0x363   : > { %1735 = vmatprep.mubr.msk.f32.mxu1 %vm1972_vm1, %v1971_v7  ;;  %1732 = vmatpush3.xpose.msk.msra.mxu1 %vm731_vm5, %v2258_v13 }
 0x364   : > { %1733 = vmatprep.subr.mxu1 %v1971_v7 }
 0x365   : > { %v591_v0 = vpop.permute.xlu1 %590 }
 0x366   : > { %vm646_vm11 = vcmp.eq.f32.partialorder %v634_v61, %v591_v0  ;;  %vm642_vm13 = vcmp.gt.f32.partialorder %v634_v61, %v591_v0  ;;  %v901_v61 = vmul.f32 %v2283_v25, %v2283_v25 }
 0x367   : > { %1734 = vmatpush3.xpose.msk.msra.mxu1 %vm731_vm5, %v2267_v14 }
 0x368   : > { %v909_v62 = vsel %vm731_vm5, %v901_v61, 0.0 }
 0x369   : > { %v2233_v1 = vpop.permute.xlu1 %659 }
 0x36a   : > { %vm662_vm14 = vcmp.ne.s32.totalorder %v2233_v1, 0 }
 0x36b   : > { %vm664_vm15 = vmand %vm646_vm11, %vm662_vm14 }
 0x36c   : > { %vm668_vm0 = vmor %vm642_vm13, %vm664_vm15  ;;  %vm892_vm13 = vcmask 58368  }
 0x36d   : > { %v1640_v3 = vsel %vm668_vm0, 1.0, %v1971_v7  ;;  %v599_v8 = vpop.permute.xlu1 %598 }
 0x36e   : > { %v1835_v4 = vpack.i.bf16 %v1640_v3, %v1639_v2  ;;  %vm647_vm6 = vcmp.eq.f32.partialorder %v638_v34, %v599_v8  ;;  %vm643_vm7 = vcmp.gt.f32.partialorder %v638_v34, %v599_v8 }
 0x36f   : > { %vm665_vm9 = vmand %vm647_vm6, %vm661_vm8 }
 0x370   : > { %1836 = vrot.lane.b32.xlu1 %v1835_v4, %s1977_s19  ;;  %vm669_vm10 = vmor %vm643_vm7, %vm665_vm9  ;;  %vm928_vm9 = vcmask 130112  }
 0x371   : > { %v1641_v46 = vsel %vm669_vm10, 1.0, %v1971_v7  ;;  %vm964_vm10 = vcmask 123904  }
 0x374   : > { %987 = vrot.lane.b32.xlu1 %v2139_v5, %s1978_s12 }
 0x3e2   : > { %v2251_v9 = vpop.permute.xlu1 %1836 }
 0x3e3   : > { %v1839_v10 = vunpack.i.h.bf16 %v2251_v9  ;;  %v1838_v51 = vunpack.i.l.bf16 %v2251_v9 }
 0x3e5   : > { %v698_v11 = vsel %vm342_vm2, %v1839_v10, 0.0  ;;  %v695_v53 = vsel %vm342_vm2, %v1838_v51, 0.0 }
 0x3e6   : > { %699 = vadd.xlane.f32.xlu1 %v698_v11  ;;  %v988_v12 = vpop.permute.xlu1 %987 }
 0x3f7   : > { %989 = vrot.lane.b32.xlu1 %v988_v12, %s1973_s0 }
 0x41b   : > { %904 = vadd.xlane.f32.xlu1 %v903_v16  ;;  %v923_v16 = vadd.s32 4294967288, %v2188_v39 }
 0x41f   : > { %913 = vadd.xlane.f32.xlu1 %v912_v19 }
 0x422   : > { %v541_v21 = vpop.f32.mrf.mxu1 }
 0x423   : > { %v542_v22 = vadd.f32 %v1636_v20, %v541_v21  ;;  %v2347_v21 = vsub.s32 %v923_v16, %v2177_v35 }
 0x424   : > { %v1730_v23 = vpop.f32.mrf.mxu1 }
 0x425   : > { %1853 = vtanh.f32 %v542_v22  ;;  %v1638_v24 = vmul.f32 -1.442695, %v542_v22  ;;  %v2351_v22 = vsub.s32 %v2188_v39, %v2177_v35 }
 0x427   : > { %1855 = vpow2.f32 %v1638_v24 }
 0x432   : > { %v2288_v26 = vpop.eup %1853 }
 0x433   : > { %547 = vrot.lane.b32.xlu0 %v2288_v26, %s1979_s17  ;;  %s1983_s17 = smov 96  }
 0x434   : > { %v1856_v27 = vpop.eup %1855 }
 0x435   : > { %v577_v28 = vadd.f32 1.0, %v1856_v27 }
 0x437   : > { %1857 = vrcp.f32 %v577_v28  ;;  %602 = vbcast.lane.b32.xlu0 %v2218_v58, 344  ;;  %v900_v58 = vmul.f32 %v2258_v13, %v2258_v13 }
 0x439   : > { %v906_v60 = vsel %vm731_vm5, %v900_v58, 0.0 }
 0x444   : > { %v1858_v29 = vpop.eup %1857 }
 0x445   : > { %v1012_v30 = vrot.slane %v1858_v29, %v594_v54  ;;  %v1004_v0 = vrot.slane %v1858_v29, %v2180_v36 }
 0x447   : > { %1015 = vbcast.lane.b32.xlu1 %v1012_v30, 288 }
 0x46f   : > { %v2331_v8 = vpop.xlane.xlu1 %699 }
 0x470   : > { %vm708_vm6 = vcmp.ge.f32.partialorder %v2331_v8, 14.0 }
 0x471   : > { %v1644_v31 = vsel %vm708_vm6, 1.0, %v1971_v7  ;;  %vm720_vm6 = vcmp.eq.f32.partialorder %v2331_v8, 15.0 }
 0x473   : > { %v990_v9 = vpop.permute.xlu1 %989 }
 0x474   : > { %v992_v36 = vcombine.low %v2161_v18, %v990_v9 }
 0x476   : > { %v999_v17 = vrot.slane %v992_v36, %v2297_v40 }
 0x478   : > { %v1000_v27 = vcombine.high %v999_v17, %v1971_v7 }
 0x4a4   : > { %v2333_v10 = vpop.xlane.xlu1 %904 }
 0x4a5   : > { %v548_v38 = vpop.permute.xlu0 %547 }
 0x4a6   : > { %v550_v41 = vcombine.low %v2288_v26, %v548_v38  ;;  %561 = vrot.lane.b32.xlu1 %v548_v38, %s1978_s12 }
 0x4a8   : > { %v557_v42 = vrot.slane %v550_v41, %v2297_v40  ;;  %v914_v12 = vpop.xlane.xlu1 %913 }
 0x4a9   : > { %v603_v43 = vpop.permute.xlu0 %602  ;;  %v937_v41 = vrot.slane %v914_v12, %v2347_v21 }
 0x4aa   : > { %v558_v44 = vcombine.high %v557_v42, %v1971_v7  ;;  %vm644_vm11 = vcmp.gt.f32.partialorder %v638_v34, %v603_v43  ;;  %vm648_vm12 = vcmp.eq.f32.partialorder %v638_v34, %v603_v43  ;;  %1736 = vmatmul.mubr.msk.f32.vlgmr.msra.gmra.mxu1 %vm731_vm5, %v557_v42  ;;  %v890_v45 = vmul.f32 %v557_v42, %v557_v42 }
 0x4ab   : > { %vm666_vm15 = vmand %vm648_vm12, %vm662_vm14  ;;  %v1032_v43 = vrot.slane %v1644_v31, %v2347_v21 }
 0x4ac   : > { %vm670_vm0 = vmor %vm644_vm11, %vm666_vm15  ;;  %1743 = vmatmul.mubr.msk.f32.vlgmr.msra.gmra.mxu0 %vm731_vm5, %v558_v44  ;;  %v893_v48 = vsel %vm892_vm13, %v890_v45, 0.0  ;;  %v891_v50 = vmul.f32 %v558_v44, %v558_v44  ;;  %vm939_vm11 = vcmask 1041409   ;;  %vm1171_vm15 = vcmask 1041408  }
 0x4ad   : > { %v1642_v47 = vsel %vm670_vm0, 1.0, %v1971_v7  ;;  %1759 = vmatprep.mubr.msk.f32.mxu0 %vm1972_vm1, %v1971_v7 }
 0x4ae   : > { %v1840_v49 = vpack.i.bf16 %v1642_v47, %v1641_v46  ;;  %v896_v52 = vsel %vm892_vm13, %v891_v50, 0.0 }
 0x4b0   : > { %1841 = vrot.lane.b32.xlu0 %v1840_v49, %s1977_s19  ;;  %s1666_s19 = sshll.u32 %s2051_s9, 5 }
 0x4b1   : > { %s2449_s21 = scalar_lea.hbm %s2501_s7, %s1666_s19 }
 0x4b9   : > { %v1016_v18 = vpop.permute.xlu1 %1015 }
 0x4ba   : > { %v1020_v28 = vsub.f32 1.0, %v1016_v18  ;;  %v1018_v39 = vmul.f32 %v1016_v18, %v1000_v27 }
 0x4ca   : > { %897 = vadd.xlane.f32.xlu1 %v896_v52 }
 0x4cf   : > { %696 = vadd.xlane.f32.xlu0 %v695_v53 }
 0x518   : > { %v562_v32 = vpop.permute.xlu1 %561 }
 0x522   : > { %v1842_v54 = vpop.permute.xlu0 %1841 }
 0x523   : > { %v1843_v55 = vunpack.i.l.bf16 %v1842_v54  ;;  %v1844_v56 = vunpack.i.h.bf16 %v1842_v54 }
 0x525   : > { %v701_v57 = vsel %vm342_vm2, %v1843_v55, 0.0  ;;  %v704_v59 = vsel %vm342_vm2, %v1844_v56, 0.0 }
 0x526   : > { %702 = vadd.xlane.f32.xlu0 %v701_v57 }
 0x52a   : > { %705 = vadd.xlane.f32.xlu0 %v704_v59 }
 0x52e   : > { %907 = vadd.xlane.f32.xlu0 %v906_v60 }
 0x532   : > { %910 = vadd.xlane.f32.xlu0 %v909_v62 }
 0x548   : > { %1007 = vbcast.lane.b32.xlu0 %v1004_v0, 288 }
 0x553   : > { %v898_v46 = vpop.xlane.xlu1 %897 }
 0x558   : > { %v2335_v11 = vpop.xlane.xlu0 %696 }
 0x559   : > { %vm707_vm7 = vcmp.ge.f32.partialorder %v2335_v11, 14.0 }
 0x55a   : > { %v1643_v34 = vsel %vm707_vm7, 1.0, %v1971_v7 }
 0x55b   : > { %v1028_v44 = vrot.slane %v1643_v34, %v2351_v22 }
 0x55d   : > { %v1033_v53 = vsel %vm928_vm9, %v1032_v43, %v1028_v44 }
 0x567   : > { %894 = vadd.xlane.f32.xlu0 %v893_v48 }
 0x56a   : > { %v2325_v1 = vpop.f32.mrf.mxu1 }
 0x56c   : > { %v1737_v2 = vpop.f32.mrf.mxu1  ;;  %v2327_v3 = vpop.f32.mrf.mxu0 }
 0x56e   : > { %v1744_v4 = vpop.f32.mrf.mxu0 }
 0x57d   : > { %559 = vrot.lane.b32.xlu0 %v2288_v26, %s1978_s12  ;;  %s2510_s12 = scalar_lea.vmem [#allocation6], %s2101_s26 }
 0x57e   : > { %s2511_s9 = smov %s2510_s12 }
 0x5af   : > { %v2338_v15 = vpop.xlane.xlu0 %702 }
 0x5b0   : > { %vm709_vm8 = vcmp.ge.f32.partialorder %v2338_v15, 14.0 }
 0x5b1   : > { %v1645_v19 = vsel %vm709_vm8, 1.0, %v1971_v7 }
 0x5b2   : > { %v1037_v24 = vrot.slane %v1645_v19, %v2351_v22 }
 0x5b3   : > { %v2344_v20 = vpop.xlane.xlu0 %705 }
 0x5b4   : > { %vm710_vm14 = vcmp.ge.f32.partialorder %v2344_v20, 14.0  ;;  %vm722_vm7 = vcmp.eq.f32.partialorder %v2344_v20, 15.0 }
 0x5b5   : > { %v1646_v23 = vsel %vm710_vm14, 1.0, %v1971_v7  ;;  %vm1164_vm14 = vcmask 15360  }
 0x5b6   : > { %v1041_v26 = vrot.slane %v1646_v23, %v2347_v21 }
 0x5b7   : > { %v908_v29 = vpop.xlane.xlu0 %907 }
 0x5b8   : > { %v1042_v35 = vsel %vm928_vm9, %v1041_v26, %v1037_v24  ;;  %v927_v27 = vrot.slane %v908_v29, %v2347_v21 }
 0x5b9   : > { %v1046_v30 = vmul.f32 %v1042_v35, %v1020_v28  ;;  %v922_v35 = vrot.slane %v2333_v10, %v2351_v22 }
 0x5bb   : > { %v911_v37 = vpop.xlane.xlu0 %910  ;;  %v1048_v38 = vadd.f32 %v1046_v30, %v1018_v39  ;;  %v929_v39 = vsel %vm928_vm9, %v927_v27, %v922_v35 }
 0x5bc   : > { %v933_v42 = vrot.slane %v911_v37, %v2351_v22 }
 0x5bd   : > { %1132 = vxpose.xlu0.b32.start.end [1/1] (short) (narrow) %v1048_v38, 16  ;;  %v1078_v45 = vsel %vm964_vm10, %v1048_v38, 0.0 }
 0x5be   : > { %v938_v47 = vsel %vm928_vm9, %v937_v41, %v933_v42  ;;  %v1079_v48 = vrot.slane %v1078_v45, 4  ;;  %vm721_vm9 = vcmp.eq.f32.partialorder %v2338_v15, 15.0 }
 0x5bf   : > { %v943_v49 = vmul.f32 %v938_v47, %v898_v46  ;;  %v1008_v50 = vpop.permute.xlu0 %1007 }
 0x5c0   : > { %v1019_v51 = vsub.f32 1.0, %v1008_v50  ;;  %v1080_v52 = vadd.f32 %v1079_v48, %v1078_v45  ;;  %v1017_v54 = vmul.f32 %v1008_v50, %v999_v17 }
 0x5c1   : > { %1859 = vrsqrt.f32 %v943_v49  ;;  %vm953_vm12 = vcmp.eq.f32.partialorder %v943_v49, inf  ;;  %v956_v19 = vand.u32 2147483648, %v943_v49  ;;  %vm955_vm13 = vcmp.eq.f32.partialorder %v943_v49, 0.0 }
 0x5c2   : > { %v1045_v55 = vmul.f32 %v1033_v53, %v1019_v51  ;;  %v1081_v57 = vrot.slane %v1080_v52, 2 }
 0x5c4   : > { %v1047_v56 = vadd.f32 %v1045_v55, %v1017_v54  ;;  %v1082_v60 = vadd.f32 %v1081_v57, %v1080_v52 }
 0x5c6   : > { %1100 = vxpose.xlu1.b32.start.end [1/1] (short) (narrow) %v1047_v56, 16  ;;  %v1071_v58 = vsel %vm964_vm10, %v1047_v56, 0.0  ;;  %v1083_v2 = vrot.slane %v1082_v60, 1 }
 0x5c7   : > { %v1072_v59 = vrot.slane %v1071_v58, 4 }
 0x5c8   : > { %v1084_v16 = vadd.f32 %v1083_v2, %v1082_v60  ;;  %v1649_v2 = vsel %vm721_vm9, 1.0, %v1971_v7 }
 0x5c9   : > { %v1073_v61 = vadd.f32 %v1072_v59, %v1071_v58  ;;  %v1648_v59 = vsel %vm720_vm6, 1.0, %v1971_v7 }
 0x5cb   : > { %v1074_v62 = vrot.slane %v1073_v61, 2 }
 0x5cd   : > { %v1075_v0 = vadd.f32 %v1074_v62, %v1073_v61  ;;  %v1093_v61 = vsub.f32 1.0, %v1648_v59  ;;  %v1650_v62 = vsel %vm722_vm7, 1.0, %v1971_v7 }
 0x5ce   : > { %v1860_v4 = vpop.eup %1859 }
 0x5cf   : > { %v952_v9 = vmul.f32 %v1860_v4, %v943_v49  ;;  %v1076_v12 = vrot.slane %v1075_v0, 1  ;;  %v1095_v4 = vsub.f32 1.0, %v1650_v62 }
 0x5d1   : > { %v1077_v36 = vadd.f32 %v1076_v12, %v1075_v0  ;;  %v954_v17 = vsel %vm953_vm12, %v943_v49, %v952_v9  ;;  %v1097_v9 = vmul.f32 %v1093_v61, %v2258_v13  ;;  %v1094_v12 = vsub.f32 1.0, %v1649_v2 }
 0x5d2   : > { %v957_v23 = vsel %vm955_vm13, %v956_v19, %v954_v17  ;;  %v1099_v20 = vmul.f32 %v1095_v4, %v2246_v6 }
 0x5d3   : > { %v2372_v18 = vsel %vm939_vm11, %v1084_v16, %v1077_v36  ;;  %v959_v24 = vadd.f32 1e-08, %v957_v23 }
 0x5d5   : > { %1861 = vrcp.f32 %v959_v24 }
 0x5e2   : > { %v1862_v26 = vpop.eup %1861 }
 0x5e3   : > { %v963_v28 = vmul.f32 %v1862_v26, %v2327_v3 }
 0x5e5   : > { %v968_v31 = vsel %vm964_vm10, %v963_v28, -inf }
 0x5f0   : > { %v895_v30 = vpop.xlane.xlu0 %894 }
 0x5f1   : > { %v942_v34 = vmul.f32 %v929_v39, %v895_v30  ;;  %969 = vmax.xlane.f32.xlu1 %v968_v31 }
 0x5f3   : > { %1863 = vrsqrt.f32 %v942_v34  ;;  %vm946_vm0 = vcmp.eq.f32.partialorder %v942_v34, inf  ;;  %v949_v22 = vand.u32 2147483648, %v942_v34  ;;  %vm948_vm8 = vcmp.eq.f32.partialorder %v942_v34, 0.0 }
 0x5f4   : > { %v560_v37 = vpop.permute.xlu0 %559 }
 0x5f5   : > { %v565_v38 = vcombine.low %v560_v37, %v562_v32 }
 0x5f7   : > { %v572_v41 = vrot.slane %v565_v38, %v2297_v40 }
 0x5f9   : > { %v573_v21 = vcombine.high %v572_v41, %v1971_v7  ;;  %1745 = vmatprep.subr.msk.mxu1 %vm1171_vm15, %v572_v41 }
 0x5fa   : > { %1746 = vmatpush3.msk.msra.mxu1 %vm1171_vm15, %v572_v41 }
 0x5fb   : > { %1750 = vmatprep.subr.msk.mxu1 %vm1171_vm15, %v573_v21 }
 0x600   : > { %v1864_v3 = vpop.eup %1863 }
 0x601   : > { %v945_v10 = vmul.f32 %v1864_v3, %v942_v34 }
 0x603   : > { %v947_v29 = vsel %vm946_vm0, %v942_v34, %v945_v10 }
 0x604   : > { %v950_v42 = vsel %vm948_vm8, %v949_v22, %v947_v29 }
 0x605   : > { %v958_v43 = vadd.f32 1e-08, %v950_v42 }
 0x607   : > { %1865 = vrcp.f32 %v958_v43 }
 0x614   : > { %v1866_v32 = vpop.eup %1865 }
 0x615   : > { %v962_v44 = vmul.f32 %v1866_v32, %v2325_v1 }
 0x617   : > { %v965_v45 = vsel %vm964_vm10, %v962_v44, -inf }
 0x618   : > { %966 = vmax.xlane.f32.xlu0 %v965_v45 }
 0x639   : > { %v1148_v47 = vpop.trf.xlu0 }
 0x63d   : > { %v1149_v49 = vpop.trf.xlu0 }
 0x642   : > { %v1116_v46 = vpop.trf.xlu1 }
 0x643   : > { %1747 = vmatprep.mubr.msk.f32.mxu1 %vm1164_vm14, %v1116_v46 }
 0x646   : > { %v1117_v48 = vpop.trf.xlu1 }
 0x647   : > { %1748 = vmatmul.mubr.msk.f32.vlgmr.msra.gmra.mxu1 %vm1164_vm14, %v1117_v48 }
 0x648   : > { %1751 = vmatpush3.msk.msra.mxu1 %vm1171_vm15, %v573_v21  ;;  %1752 = vmatprep.mubr.msk.f32.mxu1 %vm1164_vm14, %v1148_v47 }
 0x649   : > { %1762 = vmatprep.subr.mxu1 %v1971_v7 }
 0x64b   : > { %1753 = vmatmul.mubr.msk.f32.vlgmr.msra.gmra.mxu1 %vm1164_vm14, %v1149_v49 }
 0x64c   : > { %1766 = vmatprep.mubr.msk.f32.mxu1 %vm1972_vm1, %v1971_v7  ;;  %vm719_vm1 = vcmp.eq.f32.partialorder %v2335_v11, 15.0 }
 0x64d   : > { %v1647_v60 = vsel %vm719_vm1, 1.0, %v1971_v7 }
 0x64e   : > { %v1092_v0 = vsub.f32 1.0, %v1647_v60 }
 0x650   : > { %v1096_v36 = vmul.f32 %v1092_v0, %v2267_v14  ;;  %v1098_v14 = vmul.f32 %v1094_v12, %v2283_v25 }
 0x67a   : > { %v970_v1 = vpop.xlane.xlu1 %969 }
 0x67b   : > { %v972_v50 = vsub.f32 %v963_v28, %v970_v1 }
 0x67d   : > { %v975_v51 = vmul.f32 1.442695, %v972_v50 }
 0x67f   : > { %1867 = vpow2.f32 %v975_v51 }
 0x68c   : > { %v1868_v52 = vpop.eup %1867 }
 0x68d   : > { %v980_v53 = vsel %vm964_vm10, %v1868_v52, 0.0 }
 0x68e   : > { %981 = vadd.xlane.f32.xlu1 %v980_v53 }
 0x6a1   : > { %v967_v54 = vpop.xlane.xlu0 %966 }
 0x6a2   : > { %v971_v55 = vsub.f32 %v962_v44, %v967_v54 }
 0x6a4   : > { %v973_v56 = vmul.f32 1.442695, %v971_v55 }
 0x6a6   : > { %1869 = vpow2.f32 %v973_v56 }
 0x6b3   : > { %v1870_v57 = vpop.eup %1869 }
 0x6b4   : > { %v977_v58 = vsel %vm964_vm10, %v1870_v57, 0.0 }
 0x6b5   : > { %978 = vadd.xlane.f32.xlu0 %v977_v58 }
 0x707   : > { %v1749_v8 = vpop.f32.mrf.mxu1 }
 0x708   : > { %v1335_v11 = vadd.f32 %v1749_v8, %v1097_v9 }
 0x709   : > { %v1241_v16 = vpop.f32.mrf.mxu1 }
 0x70a   : > { %1530 = vst.msk [vmem:[%s2502_s8 + $0x8] sm:$0xff] %vm731_vm5, %v1335_v11  ;;  %v1334_v15 = vadd.f32 %v1241_v16, %v1096_v36  ;;  %1756 = vmatpush3.msra.mxu0 %v1335_v11 }
 0x70b   : > { %v1754_v17 = vpop.f32.mrf.mxu1  ;;  %1757 = vmatprep.subr.mxu0 %v1971_v7 }
 0x70c   : > { %1529 = vst.msk [vmem:[%s2502_s8] sm:$0xff] %vm731_vm5, %v1334_v15  ;;  %v1337_v13 = vadd.f32 %v1754_v17, %v1099_v20  ;;  %1758 = vmatpush3.msra.mxu0 %v1334_v15 }
 0x70d   : > { %v1325_v19 = vpop.f32.mrf.mxu1 }
 0x70e   : > { %1532 = vst.msk [vmem:[%s2502_s8 + $0x18] sm:$0xff] %vm731_vm5, %v1337_v13  ;;  %v1336_v23 = vadd.f32 %v1325_v19, %v1098_v14  ;;  %1763 = vmatpush3.msra.mxu1 %v1337_v13 }
 0x70f   : > { %1764 = vmatprep.subr.mxu1 %v1971_v7 }
 0x710   : > { %1531 = vst.msk [vmem:[%s2502_s8 + $0x10] sm:$0xff] %vm731_vm5, %v1336_v23  ;;  %1765 = vmatpush3.msra.mxu1 %v1336_v23 }
 0x717   : > { %v982_v6 = vpop.xlane.xlu1 %981 }
 0x718   : > { %1871 = vrcp.f32 %v982_v6 }
 0x725   : > { %v1872_v24 = vpop.eup %1871 }
 0x726   : > { %v986_v25 = vmul.f32 %v1872_v24, %v1868_v52 }
 0x728   : > { %1767 = vmatmul.mubr.msk.f32.vlgmr.msra.gmra.mxu1 %vm342_vm2, %v986_v25  ;;  %v1057_v27 = vsel %vm964_vm10, %v986_v25, 0.0 }
 0x729   : > { %v1058_v28 = vrot.slane %v1057_v27, 4 }
 0x72b   : > { %v1059_v35 = vadd.f32 %v1058_v28, %v1057_v27 }
 0x72d   : > { %v1060_v31 = vrot.slane %v1059_v35, 2 }
 0x72f   : > { %v1061_v3 = vadd.f32 %v1060_v31, %v1059_v35 }
 0x731   : > { %v1062_v42 = vrot.slane %v1061_v3, 1 }
 0x733   : > { %v1063_v44 = vadd.f32 %v1062_v42, %v1061_v3 }
 0x73e   : > { %v979_v26 = vpop.xlane.xlu0 %978 }
 0x73f   : > { %1873 = vrcp.f32 %v979_v26 }
 0x74c   : > { %v1874_v39 = vpop.eup %1873 }
 0x74d   : > { %v985_v30 = vmul.f32 %v1874_v39, %v1870_v57 }
 0x74f   : > { %1760 = vmatmul.mubr.msk.f32.vlgmr.msra.gmra.mxu0 %vm342_vm2, %v985_v30  ;;  %v1498_v34 = vcombine.low %v985_v30, %v986_v25  ;;  %v1050_v37 = vsel %vm964_vm10, %v985_v30, 0.0  ;;  %vm1523_vm10 = vcmask 654336  }
 0x750   : > { %v1051_v38 = vrot.slane %v1050_v37, 4 }
 0x751   : > { %v1505_v41 = vrot.slane %v1498_v34, %v2297_v40 }
 0x752   : > { %v1052_v21 = vadd.f32 %v1051_v38, %v1050_v37 }
 0x753   : > { %v1506_v10 = vcombine.high %v1505_v41, %v1971_v7 }
 0x754   : > { %v1053_v22 = vrot.slane %v1052_v21, 2 }
 0x755   : > { %1508 = vrot.lane.b32.xlu1 %v1506_v10, %s1981_s10  ;;  %s1905_s10 = sshll.u32 %s1984_s24, 4  ;;  %s1906_s10 = int_to_ptr.vmem [resolvable:$false] %s1905_s10 }
 0x756   : > { %v1054_v29 = vadd.f32 %v1053_v22, %v1052_v21 }
 0x758   : > { %v1055_v43 = vrot.slane %v1054_v29, 1 }
 0x75a   : > { %v1056_v32 = vadd.f32 %v1055_v43, %v1054_v29 }
 0x75c   : > { %v1066_v45 = vsel %vm939_vm11, %v1063_v44, %v1056_v32 }
 0x75d   : > { %1067 = vrot.lane.b32.xlu1 %v1066_v45, %s1970_s25 }
 0x7c7   : > { %v1509_v52 = vpop.permute.xlu1 %1508 }
 0x7c8   : > { %v1511_v53 = vsel %vm342_vm2, %v1505_v41, %v1509_v52  ;;  %vm1525_vm2 = vcmask 785408  }
 0x7e8   : > { %v1480_v46 = vpop.f32.mrf.mxu1 }
 0x7ea   : > { %v1768_v47 = vpop.f32.mrf.mxu1 }
 0x80f   : > { %v1407_v48 = vpop.f32.mrf.mxu0 }
 0x810   : > { %v1484_v49 = vcombine.low %v1407_v48, %v1480_v46 }
 0x811   : > { %v1761_v1 = vpop.f32.mrf.mxu0 }
 0x812   : > { %v1491_v50 = vrot.slane %v1484_v49, %v2297_v40  ;;  %v1049_v40 = vmul.f32 0.95, %v2139_v5 }
 0x814   : > { %v1492_v51 = vcombine.high %v1491_v50, %v1971_v7  ;;  %v1068_v7 = vpop.permute.xlu1 %1067 }
 0x815   : > { %v1070_v57 = vadd.f32 %v1068_v7, %v1049_v40 }
 0x816   : > { %1494 = vrot.lane.b32.xlu0 %v1492_v51, %s1982_s13  ;;  %s1907_s13 = scalar_lea.vmem %s1906_s10, 64 }
 0x81a   : > { %1088 = vrot.lane.b32.xlu0 %v2372_v18, %s1970_s25  ;;  %s1547_s25 = sshll.u32 %s2510_s12, 4  ;;  %v1521_v18 = vsel %vm344_vm3, %v2224_v63, %v2174_v33  ;;  %s2451_s25 = int_to_ptr.vmem [resolvable:$true] %s1547_s25 }
 0x81b   : > { %s1901_s0 = scalar_lea.vmem %s2451_s25, 32  ;;  %p1908_p12 = scmp.lt.s32.totalorder %s2451_s25, %s1906_s10 }
 0x81c   : > { %p1902_p9 = scmp.ne.s32.totalorder %s2451_s25, %s1901_s0  ;;  %p1909_p13 = scmp.lt.s32.totalorder %s1907_s13, %s1901_s0 }
 0x81e   : > { %1518 = vrot.lane.b32.xlu0 %v1511_v53, %s1983_s17  ;;  %p1903_p10 = pnand %p1902_p9, %p2068_p5  ;;  %p1910_p0 = por %p1909_p13, %p1908_p12 }
 0x820   : > { %p1904_p11 = pneg %p1903_p10 }
 0x822   : > { %p1911_p1 = pnand %p1910_p0, %p1904_p11 }
 0x888   : > { %v1495_v54 = vpop.permute.xlu0 %1494 }
 0x889   : > { %v1497_v55 = vsel %vm731_vm5, %v1491_v50, %v1495_v54 }
 0x88a   : > { %1514 = vrot.lane.b32.xlu1 %v1497_v55, %s1974_s18 }
 0x88c   : > { %v1089_v56 = vpop.permute.xlu0 %1088 }
 0x88d   : > { %v1091_v58 = vadd.f32 %v1089_v56, %v1070_v57 }
 0x890   : > { %v1519_v5 = vpop.permute.xlu0 %1518 }
 0x8fc   : > { %v1515_v59 = vpop.permute.xlu1 %1514 }
 0x8fd   : > { %v1522_v60 = vsel %vm361_vm4, %v1521_v18, %v1515_v59 }
 0x8fe   : > { %v1524_v61 = vsel %vm1523_vm10, %v1522_v60, %v1091_v58 }
 0x8ff   : > { %v1526_v62 = vsel %vm1525_vm2, %v1524_v61, %v1519_v5 }
 0x900   : > { %1527 = vst [vmem:[#allocation2] sm:$0x3] %v1526_v62  ;;  %1528 = vst [vmem:[%s2511_s9] sm:$0x3] %v1526_v62 }
 0x901   : > { %1914 = shalt.err (!%p1911_p1)
}
 0x902   : > { %s1915_s26 = scalar_lea.hbm %s2449_s21, 32  ;;  %s1919_s12 = scalar_lea.hbm %s2501_s7, 256 }
 0x903   : > { %p1916_p2 = scmp.ne.s32.totalorder %s2449_s21, %s1915_s26  ;;  %p1920_p7 = scmp.lt.s32.totalorder %s2449_s21, %s2501_s7 }
 0x904   : > { %p1921_p6 = scmp.lt.s32.totalorder %s1919_s12, %s1915_s26 }
 0x905   : > { %p1917_p3 = pnand %p1916_p2, %p2068_p5 }
 0x906   : > { %p1922_p8 = por %p1921_p6, %p1920_p7 }
 0x907   : > { %p1918_p4 = pneg %p1917_p3 }
 0x909   : > { %p1923_p9 = pnand %p1922_p8, %p1918_p4 }
 0x90b   : > { %1926 = shalt.err (!%p1923_p9)
}
 0x90c   : > { %1773 = dma.vmem_to_hbm [thread:$0]  (%p2068_p5), %s2451_s25, 32, %s2449_s21, %s1534_s23  }
 0x90d PF: > { %p1785_p10 = scmp.ge.s32.totalorder %s1965_s30, 2  ;;  %s1565_s9 = sand.u32 1, %s1953_s27  }
 0x90e   : > { %p2513_p11 = scmp.ne.s32.totalorder %s2506_s16, 0  ;;  %s1566_s22 = scalar_lea.sflag [#allocation5], %s1565_s9 }
 0x910   : > { %p1780_p12 = pnand %p1785_p10, %p2513_p11 }
 0x912   : > { %p1781_p13 = pneg %p1780_p12 }
 0x914   : > { %1948 = dma.done.wait (%p1781_p13), %s1566_s22, 32  }
 0x915   : > { %1950 = vsyncadd (%p1781_p13), %s1566_s22, 4294967264  ;;  %p20_p0 = scmp.ge.s32.totalorder %s2055_s11, 10   ;;  %s2514_s27 = smov %s1957_s28 }
 0x916   : > { %s2515_s28 = smov %s1961_s29  ;;  %s2516_s29 = smov %s2066_s14 }
 0x917   : > { %s2517_s30 = smov %s2055_s11  ;;  %22 = sbr.rel (!%p20_p0) target bundleno = 6 (0x6), region = 100 }
 0x91c   :  { %1571 = vsyncpa [#allocation4], 1 }
 0x91d   :  { %1573 = vsyncpa [#allocation4 + $0x1], 1 }
 0x91e   :  { %1574 = vsyncpa [#allocation5], 1 }
 0x91f   :  { %1576 = vsyncpa [#allocation5 + $0x1], 1 }

</bundles_post_ra>
